<compile_context>
chip_gen: v5e
topology: v5e:2x2
jax: 0.10.0
libtpu: 0.0.40
codegen_flags: <defaults>
</compile_context>

<pallas_src>
import numpy as np
import jax
import jax.numpy as jnp
from jax.experimental import pallas as pl
from jax.experimental.pallas import tpu as pltpu

HIDDEN = 128
LATENT = 64


def _round_up(x, m):
    return ((x + m - 1) // m) * m


def _orthogonal(key, shape, gain):
    """Deterministic orthogonal init (same semantics as nn.init.orthogonal_)."""
    rows, cols = shape
    n = max(rows, cols)
    a = jax.random.normal(key, (n, n), dtype=jnp.float32)
    q, r = jnp.linalg.qr(a)
    q = q * jnp.sign(jnp.diag(r))[None, :]          # sign fix -> unique decomposition
    return (gain * q[:rows, :cols]).astype(jnp.float32)


def init_params(key, input_shape, latent_dim=LATENT):
    """Weights stored as (in, out) = transpose of PyTorch's (out, in); biases zero."""
    k1, k2, k3 = jax.random.split(key, 3)
    gain = float(np.sqrt(2.0))
    w1 = _orthogonal(k1, (HIDDEN, input_shape), gain).T      # (D_in, 128)
    w2 = _orthogonal(k2, (HIDDEN, HIDDEN), gain).T           # (128, 128)
    w3 = _orthogonal(k3, (latent_dim, HIDDEN), gain).T       # (128, latent)
    b1 = jnp.zeros((1, HIDDEN), jnp.float32)
    b2 = jnp.zeros((1, HIDDEN), jnp.float32)
    b3 = jnp.zeros((1, latent_dim), jnp.float32)
    return w1, b1, w2, b2, w3, b3


def _make_kernel(n_sub, sub_b):
    def kernel(x_ref, w1_ref, b1_ref, w2_ref, b2_ref, w3_ref, b3_ref, o_ref):
        # Weights / biases are VMEM-resident for the whole block (constant index_map).
        w1 = w1_ref[...]
        w2 = w2_ref[...]
        w3 = w3_ref[...]
        b1 = b1_ref[...]
        b2 = b2_ref[...]
        b3 = b3_ref[...]

        def body(i, carry):
            r = pl.multiple_of(i * sub_b, sub_b)
            x = x_ref[pl.ds(r, sub_b), :]                               # (sub_b, K) bf16
            h1 = jnp.dot(x, w1, preferred_element_type=jnp.float32) + b1
            h1 = jnp.maximum(h1, 0.0)
            h2 = jnp.dot(h1.astype(w2.dtype), w2,
                         preferred_element_type=jnp.float32) + b2
            h2 = jnp.maximum(h2, 0.0)
            out = jnp.dot(h2.astype(w3.dtype), w3,
                          preferred_element_type=jnp.float32) + b3
            o_ref[pl.ds(r, sub_b), :] = out.astype(o_ref.dtype)         # lane-dense store
            return carry

        jax.lax.fori_loop(0, n_sub, body, 0, unroll=True)

    return kernel


def rnd_mlp_forward(x, params, *, block_b=512, compute_dtype=jnp.bfloat16):
    """Pallas forward: x (B, D_in) -> (B, latent)."""
    w1, b1, w2, b2, w3, b3 = params
    B, D_in = x.shape
    latent = w3.shape[1]
    out_dtype = x.dtype

    # ---- pad the contraction dim (D_in) to a multiple of 128 (zero rows) ----
    K = _round_up(max(D_in, 128), 128)
    if K != D_in:
        x = jnp.pad(x, ((0, 0), (0, K - D_in)))
        w1 = jnp.pad(w1, ((0, K - D_in), (0, 0)))

    # ---- pad the output dim to 128 so stores are lane-dense; slice back later ----
    N = _round_up(max(latent, 128), 128)
    if N != latent:
        w3 = jnp.pad(w3, ((0, 0), (0, N - latent)))
        b3 = jnp.pad(b3, ((0, 0), (0, N - latent)))

    # bf16 operands for the MXU (f32 accumulate); biases stay f32.
    x = x.astype(compute_dtype)
    w1 = w1.astype(compute_dtype)
    w2 = w2.astype(compute_dtype)
    w3 = w3.astype(compute_dtype)
    b1 = b1.astype(jnp.float32)
    b2 = b2.astype(jnp.float32)
    b3 = b3.astype(jnp.float32)

    # ---- batch tiling ----
    b_pad = _round_up(B, 8)
    sub_b = min(128, b_pad)                                  # in-register sub-tile rows
    blk = max(sub_b, (min(block_b, b_pad) // sub_b) * sub_b)
    if b_pad >= 2 * sub_b:                                   # keep >=2 grid steps (v7x: 2 TCs)
        half = _round_up((b_pad + 1) // 2, sub_b)
        blk = min(blk, half)
    block_b = blk
    n_sub = block_b // sub_b
    grid = (pl.cdiv(B, block_b),)

    full = lambda arr: pl.BlockSpec(arr.shape, lambda i: (0, 0))

    # TODO(synk): for very large D_in (>=4096) with block_b>=512 on v7x, set
    # pltpu.CompilerParams(vmem_limit_bytes=...) explicitly (scoped default 32 MiB).
    out = pl.pallas_call(
        _make_kernel(n_sub, sub_b),
        out_shape=jax.ShapeDtypeStruct((B, N), out_dtype),
        grid_spec=pltpu.PrefetchScalarGridSpec(
            num_scalar_prefetch=0,
            grid=grid,
            in_specs=[
                pl.BlockSpec((block_b, K), lambda i: (i, 0)),    # x tile (batch-tiled)
                full(w1), full(b1),
                full(w2), full(b2),
                full(w3), full(b3),
            ],
            out_specs=pl.BlockSpec((block_b, N), lambda i: (i, 0)),
        ),
        compiler_params=pltpu.CompilerParams(
            dimension_semantics=("parallel",)),
    )(x, w1, b1, w2, b2, w3, b3)

    return out[:, :latent]


def rnd_mlp_reference(x, params, compute_dtype=jnp.float32):
    """Pure-JAX reference with the same operand-dtype policy as the kernel."""
    w1, b1, w2, b2, w3, b3 = params

    def dot(a, b):
        return jnp.dot(a.astype(compute_dtype), b.astype(compute_dtype),
                       preferred_element_type=jnp.float32)

    h1 = jnp.maximum(dot(x, w1) + b1, 0.0)
    h2 = jnp.maximum(dot(h1, w2) + b2, 0.0)
    return dot(h2, w3) + b3


if __name__ == "__main__":
    key = jax.random.PRNGKey(0)
    k_x1, k_x2, k_p = jax.random.split(key, 3)

    # --- small case: batch=8, input_shape=32, latent=64 ---
    B, D_IN = 8, 32
    params = init_params(k_p, D_IN, LATENT)
    x = jax.random.normal(k_x1, (B, D_IN), dtype=jnp.float32)

    out = jax.block_until_ready(rnd_mlp_forward(x, params))
    ref = rnd_mlp_reference(x, params, compute_dtype=jnp.bfloat16)
    assert out.shape == (B, LATENT), out.shape
    np.testing.assert_allclose(np.asarray(out), np.asarray(ref), rtol=5e-3, atol=5e-3)

    # --- slightly larger case: exercises multi-step grid, K/N zero-padding,
    #     ragged last batch tile and the in-kernel 128-row sub-tiling ---
    B2, D_IN2 = 384, 160
    params2 = init_params(k_p, D_IN2, LATENT)
    x2 = jax.random.normal(k_x2, (B2, D_IN2), dtype=jnp.float32)
    out2 = jax.block_until_ready(rnd_mlp_forward(x2, params2))
    ref2 = rnd_mlp_reference(x2, params2, compute_dtype=jnp.bfloat16)
    assert out2.shape == (B2, LATENT), out2.shape
    np.testing.assert_allclose(np.asarray(out2), np.asarray(ref2), rtol=5e-3, atol=5e-3)

    print("KERNEL_OK")
</pallas_src>

<mosaic_0001>
module attributes {stable_mosaic.version = 11 : i64} {
  func.func @kernel(%arg0: i32, %arg1: memref<8x128xbf16, #tpu.memory_space<vmem>>, %arg2: memref<128x128xbf16, #tpu.memory_space<vmem>>, %arg3: memref<1x128xf32, #tpu.memory_space<vmem>>, %arg4: memref<128x128xbf16, #tpu.memory_space<vmem>>, %arg5: memref<1x128xf32, #tpu.memory_space<vmem>>, %arg6: memref<128x128xbf16, #tpu.memory_space<vmem>>, %arg7: memref<1x128xf32, #tpu.memory_space<vmem>>, %arg8: memref<8x128xf32, #tpu.memory_space<vmem>>) attributes {dimension_semantics = [#tpu.dimension_semantics<parallel>], iteration_bounds = array<i64: 1>, scalar_prefetch = 0 : i64, scratch_operands = 0 : i64, tpu.core_type = #tpu.core_type<tc>, window_params = [{transform_indices = @transform_0, window_bounds = array<i64: 8, 128>}, {pipeline_mode = #tpu.pipeline_mode<synchronous>, transform_indices = @transform_1, window_bounds = array<i64: 128, 128>}, {pipeline_mode = #tpu.pipeline_mode<synchronous>, transform_indices = @transform_2, window_bounds = array<i64: 1, 128>}, {pipeline_mode = #tpu.pipeline_mode<synchronous>, transform_indices = @transform_3, window_bounds = array<i64: 128, 128>}, {pipeline_mode = #tpu.pipeline_mode<synchronous>, transform_indices = @transform_4, window_bounds = array<i64: 1, 128>}, {pipeline_mode = #tpu.pipeline_mode<synchronous>, transform_indices = @transform_5, window_bounds = array<i64: 128, 128>}, {pipeline_mode = #tpu.pipeline_mode<synchronous>, transform_indices = @transform_6, window_bounds = array<i64: 1, 128>}, {transform_indices = @transform_7, window_bounds = array<i64: 8, 128>}]} {
    %c0 = arith.constant 0 : index
    %c0_0 = arith.constant 0 : index
    %0 = vector.load %arg2[%c0, %c0_0] : memref<128x128xbf16, #tpu.memory_space<vmem>>, vector<128x128xbf16>
    %c0_1 = arith.constant 0 : index
    %c0_2 = arith.constant 0 : index
    %1 = vector.load %arg4[%c0_1, %c0_2] : memref<128x128xbf16, #tpu.memory_space<vmem>>, vector<128x128xbf16>
    %c0_3 = arith.constant 0 : index
    %c0_4 = arith.constant 0 : index
    %2 = vector.load %arg6[%c0_3, %c0_4] : memref<128x128xbf16, #tpu.memory_space<vmem>>, vector<128x128xbf16>
    %c0_5 = arith.constant 0 : index
    %c0_6 = arith.constant 0 : index
    %3 = vector.load %arg3[%c0_5, %c0_6] : memref<1x128xf32, #tpu.memory_space<vmem>>, vector<1x128xf32>
    %c0_7 = arith.constant 0 : index
    %c0_8 = arith.constant 0 : index
    %4 = vector.load %arg5[%c0_7, %c0_8] : memref<1x128xf32, #tpu.memory_space<vmem>>, vector<1x128xf32>
    %c0_9 = arith.constant 0 : index
    %c0_10 = arith.constant 0 : index
    %5 = vector.load %arg7[%c0_9, %c0_10] : memref<1x128xf32, #tpu.memory_space<vmem>>, vector<1x128xf32>
    %c0_i32 = arith.constant 0 : i32
    %c8_i32 = arith.constant 8 : i32
    %6 = arith.muli %c0_i32, %c8_i32 : i32
    %7 = tpu.assume_multiple %6, 8 : i32
    %8 = arith.index_cast %7 : i32 to index
    %c0_11 = arith.constant 0 : index
    %9 = vector.load %arg1[%8, %c0_11] : memref<8x128xbf16, #tpu.memory_space<vmem>>, vector<8x128xbf16>
    %cst = arith.constant dense<0.000000e+00> : vector<8x128xf32>
    %10 = tpu.matmul %9, %0, %cst {dimension_numbers = #tpu.dot_dimension_numbers<[1], [0], [0], [1], [0, 0, 1, 1], [], []>} : vector<8x128xbf16>, vector<128x128xbf16>, vector<8x128xf32> -> vector<8x128xf32>
    %11 = vector.broadcast %3 : vector<1x128xf32> to vector<8x128xf32>
    %12 = arith.addf %10, %11 : vector<8x128xf32>
    %cst_12 = arith.constant 0.000000e+00 : f32
    %13 = vector.broadcast %cst_12 : f32 to vector<8x128xf32>
    %14 = arith.maximumf %12, %13 : vector<8x128xf32>
    %15 = arith.truncf %14 : vector<8x128xf32> to vector<8x128xbf16>
    %cst_13 = arith.constant dense<0.000000e+00> : vector<8x128xf32>
    %16 = tpu.matmul %15, %1, %cst_13 {dimension_numbers = #tpu.dot_dimension_numbers<[1], [0], [0], [1], [0, 0, 1, 1], [], []>} : vector<8x128xbf16>, vector<128x128xbf16>, vector<8x128xf32> -> vector<8x128xf32>
    %17 = vector.broadcast %4 : vector<1x128xf32> to vector<8x128xf32>
    %18 = arith.addf %16, %17 : vector<8x128xf32>
    %cst_14 = arith.constant 0.000000e+00 : f32
    %19 = vector.broadcast %cst_14 : f32 to vector<8x128xf32>
    %20 = arith.maximumf %18, %19 : vector<8x128xf32>
    %21 = arith.truncf %20 : vector<8x128xf32> to vector<8x128xbf16>
    %cst_15 = arith.constant dense<0.000000e+00> : vector<8x128xf32>
    %22 = tpu.matmul %21, %2, %cst_15 {dimension_numbers = #tpu.dot_dimension_numbers<[1], [0], [0], [1], [0, 0, 1, 1], [], []>} : vector<8x128xbf16>, vector<128x128xbf16>, vector<8x128xf32> -> vector<8x128xf32>
    %23 = vector.broadcast %5 : vector<1x128xf32> to vector<8x128xf32>
    %24 = arith.addf %22, %23 : vector<8x128xf32>
    %25 = arith.index_cast %7 : i32 to index
    %c0_16 = arith.constant 0 : index
    %26 = vector.load %arg8[%25, %c0_16] : memref<8x128xf32, #tpu.memory_space<vmem>>, vector<8x128xf32>
    tpu.vector_store %arg8[%25, %c0_16], %24 {strides = array<i32>} : memref<8x128xf32, #tpu.memory_space<vmem>>, vector<8x128xf32>,
    %c1_i32 = arith.constant 1 : i32
    return
  }
  func.func @transform_0(%arg0: i32) -> (i32, i32) {
    %c0_i32 = arith.constant 0 : i32
    %c0_i32_0 = arith.constant 0 : i32
    return %arg0, %c0_i32 : i32, i32
  }
  func.func @transform_1(%arg0: i32) -> (i32, i32) {
    %c0_i32 = arith.constant 0 : i32
    %c0_i32_0 = arith.constant 0 : i32
    %c0_i32_1 = arith.constant 0 : i32
    return %c0_i32, %c0_i32_0 : i32, i32
  }
  func.func @transform_2(%arg0: i32) -> (i32, i32) {
    %c0_i32 = arith.constant 0 : i32
    %c0_i32_0 = arith.constant 0 : i32
    %c0_i32_1 = arith.constant 0 : i32
    return %c0_i32, %c0_i32_0 : i32, i32
  }
  func.func @transform_3(%arg0: i32) -> (i32, i32) {
    %c0_i32 = arith.constant 0 : i32
    %c0_i32_0 = arith.constant 0 : i32
    %c0_i32_1 = arith.constant 0 : i32
    return %c0_i32, %c0_i32_0 : i32, i32
  }
  func.func @transform_4(%arg0: i32) -> (i32, i32) {
    %c0_i32 = arith.constant 0 : i32
    %c0_i32_0 = arith.constant 0 : i32
    %c0_i32_1 = arith.constant 0 : i32
    return %c0_i32, %c0_i32_0 : i32, i32
  }
  func.func @transform_5(%arg0: i32) -> (i32, i32) {
    %c0_i32 = arith.constant 0 : i32
    %c0_i32_0 = arith.constant 0 : i32
    %c0_i32_1 = arith.constant 0 : i32
    return %c0_i32, %c0_i32_0 : i32, i32
  }
  func.func @transform_6(%arg0: i32) -> (i32, i32) {
    %c0_i32 = arith.constant 0 : i32
    %c0_i32_0 = arith.constant 0 : i32
    %c0_i32_1 = arith.constant 0 : i32
    return %c0_i32, %c0_i32_0 : i32, i32
  }
  func.func @transform_7(%arg0: i32) -> (i32, i32) {
    %c0_i32 = arith.constant 0 : i32
    %c0_i32_0 = arith.constant 0 : i32
    return %arg0, %c0_i32 : i32, i32
  }
}

</mosaic_0001>

<bundles_post_ra>
// kernel: tpu_custom_call.1
= control target key start
LH: loop header
LB: loop body
LE: loop exit
PB: predicated region body
PF: predicated region fallthrough
CT: control target
= control target key end

     0   :  { %12 = vsyncpa [#allocation3], 0  ;;  %s685_s0 = inlined_call_operand.hbm [shape: bf16[8,128], index: 0, kind: input, shape index: {}]   ;;  %s686_s1 = inlined_call_operand.hbm [shape: bf16[128,128], index: 1, kind: input, shape index: {}]   ;;  %s687_s2 = inlined_call_operand.vmem [shape: f32[1,128], index: 2, kind: input, shape index: {}]   ;;  %s688_s3 = inlined_call_operand.hbm [shape: bf16[128,128], index: 3, kind: input, shape index: {}]   ;;  %s689_s4 = inlined_call_operand.vmem [shape: f32[1,128], index: 4, kind: input, shape index: {}]   ;;  %s690_s5 = inlined_call_operand.hbm [shape: bf16[128,128], index: 5, kind: input, shape index: {}]   ;;  %s691_s6 = inlined_call_operand.vmem [shape: f32[1,128], index: 6, kind: input, shape index: {}]   ;;  %s692_s7 = inlined_call_operand.hbm [shape: f32[8,128], index: 7, kind: output, shape index: {}]  }
   0x1   :  { %13 = vsyncpa [#allocation6], 0 }
   0x2   :  { %14 = vsyncpa [#allocation9], 0  ;;  %s31_s26 = sshll.u32 %s686_s1, 4  ;;  %s32_s26 = int_to_ptr.hbm [resolvable:$true] %s31_s26 }
   0x3   :  { %15 = vsyncpa [#allocation4], 0  ;;  %s614_s27 = smov [#allocation5]   ;;  %s21_s8 = sshll.u32 %s685_s0, 4  ;;  %s22_s8 = int_to_ptr.hbm [resolvable:$true] %s21_s8 }
   0x4   :  { %s33_s28 = sshll.u32 %s614_s27, 4  ;;  %s615_s9 = smov 64   ;;  %s34_s28 = int_to_ptr.vmem [resolvable:$true] %s33_s28 }
   0x5   :  { %s616_s10 = smov 4   ;;  %s617_s11 = smov [#allocation2]  }
   0x6   :  { %39 = dma.hbm_to_vmem [thread:$0]  %s32_s26, 1024, %s34_s28, [#allocation6], %s615_s9, %s615_s9, %s616_s10  }
   0x7   :  { %s23_s12 = sshll.u32 %s617_s11, 4  ;;  %s46_s15 = sshll.u32 %s688_s3, 4  ;;  %s24_s12 = int_to_ptr.vmem [resolvable:$true] %s23_s12  ;;  %s47_s15 = int_to_ptr.hbm [resolvable:$true] %s46_s15 }
   0x8   :  { %26 = dma.hbm_to_vmem [thread:$0]  %s22_s8, 64, %s24_s12, [#allocation3]  }
   0x9   :  { %s61_s17 = sshll.u32 %s690_s5, 4  ;;  %s618_s18 = smov [#allocation7]   ;;  %s62_s17 = int_to_ptr.hbm [resolvable:$true] %s61_s17 }
   0xa   :  { %s48_s19 = sshll.u32 %s618_s18, 4  ;;  %s619_s0 = smov [#allocation8]   ;;  %s49_s19 = int_to_ptr.vmem [resolvable:$true] %s48_s19 }
   0xb   :  { %54 = dma.hbm_to_vmem [thread:$0]  %s47_s15, 1024, %s49_s19, [#allocation6], %s615_s9, %s615_s9, %s616_s10  }
   0xc   :  { %s63_s20 = sshll.u32 %s619_s0, 4  ;;  %s64_s20 = int_to_ptr.vmem [resolvable:$true] %s63_s20 }
   0xd   :  { %69 = dma.hbm_to_vmem [thread:$0]  %s62_s17, 1024, %s64_s20, [#allocation9], %s615_s9, %s615_s9, %s616_s10  }
   0xe   :  { %606 = dma.done.wait [#allocation3], 64  }
   0xf   :  { %607 = vsyncadd [#allocation3], 4294967232 }
  0x10   :  { %608 = dma.done.wait [#allocation6], 2048  }
  0x11   :  { %609 = vsyncadd [#allocation6], 4294965248 }
  0x12   :  { %610 = dma.done.wait [#allocation9], 1024  }
  0x13   :  { %611 = vsyncadd [#allocation9], 4294966272  ;;  %v459_v0 = vld [vmem:[#allocation5 + $0x38] sm:$0xff]  ;;  %v458_v1 = vld [vmem:[#allocation5 + $0x30] sm:$0xff]  ;;  %s620_s24 = smov [#allocation10]   ;;  %s344_s28 = sshll.u32 %s692_s7, 4  ;;  %s345_s28 = int_to_ptr.hbm [resolvable:$true] %s344_s28 }
  0x14   :  { %191 = vmatpush.bf16.msra.mxu0 %v459_v0  ;;  %v467_v2 = vld [vmem:[#allocation7 + $0x38] sm:$0xff]  ;;  %v466_v3 = vld [vmem:[#allocation7 + $0x30] sm:$0xff]  ;;  %v457_v4 = vld [vmem:[#allocation5 + $0x28] sm:$0xff]  ;;  %s342_s25 = sshll.u32 %s620_s24, 4  ;;  %s343_s25 = int_to_ptr.vmem [resolvable:$true] %s342_s25 }
  0x15   :  { %257 = vmatpush.bf16.msra.mxu1 %v467_v2  ;;  %v465_v5 = vld [vmem:[#allocation7 + $0x28] sm:$0xff]  ;;  %v456_v6 = vld [vmem:[#allocation5 + $0x20] sm:$0xff]  ;;  %v455_v8 = vld [vmem:[#allocation5 + $0x18] sm:$0xff] }
  0x16   :  { %v464_v7 = vld [vmem:[#allocation7 + $0x20] sm:$0xff]  ;;  %v463_v9 = vld [vmem:[#allocation7 + $0x18] sm:$0xff]  ;;  %v454_v10 = vld [vmem:[#allocation5 + $0x10] sm:$0xff] }
  0x17   :  { %v462_v11 = vld [vmem:[#allocation7 + $0x10] sm:$0xff]  ;;  %v453_v12 = vld [vmem:[#allocation5 + $0x8] sm:$0xff]  ;;  %v452_v13 = vld [vmem:[#allocation5] sm:$0xff] }
  0x18   :  { %192 = vmatpush.bf16.msra.mxu0 %v458_v1  ;;  %v139_v14 = vld [vmem:[#allocation2] sm:$0xf]  ;;  %v461_v15 = vld [vmem:[#allocation7 + $0x8] sm:$0xff]  ;;  %v460_v16 = vld [vmem:[#allocation7] sm:$0xff] }
  0x19   :  { %258 = vmatpush.bf16.msra.mxu1 %v466_v3  ;;  %v475_v17 = vld [vmem:[#allocation8 + $0x38] sm:$0xff]  ;;  %v474_v18 = vld [vmem:[#allocation8 + $0x30] sm:$0xff]  ;;  %v473_v19 = vld [vmem:[#allocation8 + $0x28] sm:$0xff] }
  0x1a   :  { %323 = vmatpush.bf16.msra.mxu2 %v475_v17  ;;  %v472_v20 = vld [vmem:[#allocation8 + $0x20] sm:$0xff]  ;;  %v471_v21 = vld [vmem:[#allocation8 + $0x18] sm:$0xff]  ;;  %v470_v22 = vld [vmem:[#allocation8 + $0x10] sm:$0xff] }
  0x1b   :  { %v483_v23 = vld [vmem:[%s687_s2] ss:$0 sm:$0xff]  ;;  %v469_v29 = vld [vmem:[#allocation8 + $0x8] sm:$0xff]  ;;  %v468_v30 = vld [vmem:[#allocation8] sm:$0xff] }
  0x1c   :  { %193 = vmatpush.bf16.msra.mxu0 %v457_v4  ;;  %v484_v31 = vld [vmem:[%s689_s4] ss:$0 sm:$0xff] }
  0x1d   :  { %259 = vmatpush.bf16.msra.mxu1 %v465_v5  ;;  %v485_v37 = vld [vmem:[%s691_s6] ss:$0 sm:$0xff] }
  0x1e   :  { %324 = vmatpush.bf16.msra.mxu2 %v474_v18 }
  0x20   :  { %194 = vmatpush.bf16.msra.mxu0 %v456_v6 }
  0x21   :  { %260 = vmatpush.bf16.msra.mxu1 %v464_v7 }
  0x22   :  { %325 = vmatpush.bf16.msra.mxu2 %v473_v19 }
  0x24   :  { %195 = vmatpush.bf16.msra.mxu0 %v455_v8 }
  0x25   :  { %261 = vmatpush.bf16.msra.mxu1 %v463_v9 }
  0x26   :  { %326 = vmatpush.bf16.msra.mxu2 %v472_v20 }
  0x28   :  { %196 = vmatpush.bf16.msra.mxu0 %v454_v10 }
  0x29   :  { %262 = vmatpush.bf16.msra.mxu1 %v462_v11 }
  0x2a   :  { %327 = vmatpush.bf16.msra.mxu2 %v471_v21 }
  0x2c   :  { %197 = vmatpush.bf16.msra.mxu0 %v453_v12 }
  0x2d   :  { %263 = vmatpush.bf16.msra.mxu1 %v461_v15 }
  0x2e   :  { %328 = vmatpush.bf16.msra.mxu2 %v470_v22 }
  0x30   :  { %198 = vmatpush.bf16.msra.mxu0 %v452_v13 }
  0x31   :  { %264 = vmatpush.bf16.msra.mxu1 %v460_v16 }
  0x32   :  { %329 = vmatpush.bf16.msra.mxu2 %v469_v29 }
  0x33   :  { %199 = vmatmul.bf16.vlgmr.msra.gmra.mxu0 %v139_v14 }
  0x36   :  { %330 = vmatpush.bf16.msra.mxu2 %v468_v30 }
  0xb0   :  { %v200_v24 = vpop.f32.mrf.mxu0 }
  0xb1   :  { %v201_v25 = vadd.f32 %v483_v23, %v200_v24 }
  0xb3   :  { %v204_v26 = vmax.f32 %v201_v25, 0.0 }
  0xb5   :  { %v205_v27 = vpack.c.bf16 %v204_v26, %v204_v26 }
  0xb7   :  { %265 = vmatmul.bf16.vlgmr.msra.gmra.mxu1 %v205_v27 }
  0xb8   :  { %v202_v28 = vpop.f32.mrf.mxu0 }
 0x134   :  { %v266_v32 = vpop.f32.mrf.mxu1 }
 0x135   :  { %v267_v33 = vadd.f32 %v484_v31, %v266_v32 }
 0x137   :  { %v270_v34 = vmax.f32 %v267_v33, 0.0 }
 0x139   :  { %v271_v35 = vpack.c.bf16 %v270_v34, %v270_v34 }
 0x13b   :  { %331 = vmatmul.bf16.vlgmr.msra.gmra.mxu2 %v271_v35 }
 0x13c   :  { %v268_v36 = vpop.f32.mrf.mxu1 }
 0x1be   :  { %v332_v38 = vpop.f32.mrf.mxu2 }
 0x1bf   :  { %v333_v39 = vadd.f32 %v485_v37, %v332_v38 }
 0x1c1   :  { %336 = vst [vmem:[#allocation10] sm:$0xff] %v333_v39 }
 0x1c2   :  { %347 = dma.vmem_to_hbm [thread:$0]  %s343_s25, 128, %s345_s28, [#allocation4]  }
 0x1c6   :  { %v334_v40 = vpop.f32.mrf.mxu2 }
 0x1c7   :  { %612 = dma.done.wait [#allocation4], 128  }
 0x1c8   :  { %613 = vsyncadd [#allocation4], 4294967168 }
 0x1c9   :  { %352 = vsyncpa [#allocation3], 1 }
 0x1ca   :  { %353 = vsyncpa [#allocation6], 1 }
 0x1cb   :  { %354 = vsyncpa [#allocation9], 1 }
 0x1cc   :  { %355 = vsyncpa [#allocation4], 1 }

</bundles_post_ra>
